<compile_context>
chip_gen: v7x
topology: tpu7x:2x2x1
jax: 0.10.0
libtpu: 0.0.40
codegen_flags: <defaults>
</compile_context>

<pallas_src>
import functools

import jax
import jax.numpy as jnp
from jax.experimental import pallas as pl
from jax.experimental.pallas import tpu as pltpu


def _round_up(x, m):
    return ((x + m - 1) // m) * m


def _choose_tiles(HW, batch, tile_sp, sub_sp):
    """Pick (tile_sp, sub_sp, HW_pad). tile_sp / sub_sp are multiples of 128,
    sub_sp divides tile_sp, HW_pad is HW rounded up to tile_sp."""
    sub_sp = max(128, (sub_sp // 128) * 128)
    tile_sp = max(sub_sp, (tile_sp // sub_sp) * sub_sp)
    hw_ceil = _round_up(HW, 128)
    if hw_ceil <= tile_sp:
        tile_sp = hw_ceil
        if batch == 1 and tile_sp > 128:
            # keep >= 2 spatial grid steps so both v7x TensorCores get work
            tile_sp = _round_up(hw_ceil // 2, 128)
    sub_sp = min(sub_sp, tile_sp)
    while tile_sp % sub_sp:
        sub_sp -= 128
    HW_pad = _round_up(HW, tile_sp)
    return tile_sp, sub_sp, HW_pad


def _pack_params(params, *, D, W, input_ch, output_ch, skips,
                 param_dtype=jnp.float32):
    """Pack every weight/bias into one [R, Kp] slab.

    Weights are stored [out, in] (PyTorch nn.Linear layout).  Each weight
    occupies a row block (rows padded to a multiple of 8); its bias (if any)
    sits in column `in_dim` of the same rows.  Skip-consuming layers are
    split column-wise so the kernel never concatenates:
        cat([input, h]) @ W^T  ==  Wx @ input + Wh @ h   (pixel-major form).
    Returns (slab, plan) where plan is a static tuple the kernel unrolls.
    """
    blocks = []
    plan = []
    row = 0
    max_cols = 0

    def add(w, b):
        nonlocal row, max_cols
        out_d, in_d = int(w.shape[0]), int(w.shape[1])
        off = row
        row += _round_up(out_d, 8)
        max_cols = max(max_cols, in_d + (1 if b is not None else 0))
        blocks.append((off, w, b))
        return (off, out_d, in_d)

    for i in range(D):
        w, b = params["pts"][i]                      # w: [out, in], b: [out]
        if i >= 1 and (i - 1) in skips:              # consumes cat([input, h])
            bx = add(w[:, :input_ch], None)
            bh = add(w[:, input_ch:], b)
            plan.append(("skip", bx, bh))
        else:
            plan.append(("dense", add(w, b)))
    w_out, b_out = params["out"]
    plan.append(("out", add(w_out, b_out)))

    R = _round_up(row, 8)
    Kp = _round_up(max_cols, 128)
    slab = jnp.zeros((R, Kp), dtype=param_dtype)
    for off, w, b in blocks:
        out_d, in_d = int(w.shape[0]), int(w.shape[1])
        slab = slab.at[off:off + out_d, :in_d].set(w.astype(param_dtype))
        if b is not None:
            slab = slab.at[off:off + out_d, in_d].set(b.astype(param_dtype))
    return slab, tuple(plan)


def _mlp_decoder_kernel(plan, n_sub, sub, out_rescale, act_fn,
                        x_ref, p_ref, o_ref):
    """One grid step: full MLP on a (C, tile_sp) pixel block.

    x_ref: (input_ch, tile_sp), p_ref: packed param slab, o_ref:
    (output_ch, tile_sp).  Pixels are on lanes; channels on sublanes.
    The block is processed in `n_sub` sub-tiles of `sub` lanes to keep
    vreg pressure bounded while the DMA tile stays large.
    """

    def ld_w(off, out_d, in_d):
        return p_ref[off:off + out_d, 0:in_d].astype(jnp.float32)

    def ld_b(off, out_d, in_d):
        return p_ref[off:off + out_d, in_d:in_d + 1].astype(jnp.float32)

    def compute(lane0):                      # lane0 is a static Python int
        xin = x_ref[:, lane0:lane0 + sub].astype(jnp.float32)
        h = xin
        for entry in plan:
            kind = entry[0]
            if kind == "dense":
                off, out_d, in_d = entry[1]
                z = jnp.dot(ld_w(off, out_d, in_d), h,
                            preferred_element_type=jnp.float32)
                h = jnp.maximum(z + ld_b(off, out_d, in_d), 0.0)
            elif kind == "skip":
                offx, out_d, in_x = entry[1]
                offh, _, in_h = entry[2]
                z = (jnp.dot(ld_w(offx, out_d, in_x), xin,
                             preferred_element_type=jnp.float32)
                     + jnp.dot(ld_w(offh, out_d, in_h), h,
                               preferred_element_type=jnp.float32)
                     + ld_b(offh, out_d, in_h))
                h = jnp.maximum(z, 0.0)
            else:  # "out": final linear, no relu; fused epilogue
                off, out_d, in_d = entry[1]
                h = jnp.dot(ld_w(off, out_d, in_d), h,
                            preferred_element_type=jnp.float32)
                h = h + ld_b(off, out_d, in_d)
        if out_rescale != 1.0:
            h = h * jnp.float32(out_rescale)
        if act_fn is not None:
            h = act_fn(h)
        o_ref[:, lane0:lane0 + sub] = h.astype(o_ref.dtype)

    # Static unrolled sub-tile loop (offsets are compile-time constants, so
    # every slice is a static, lane-aligned VMEM access).
    for s in range(n_sub):
        compute(s * sub)


def mlp_decoder_2d(x, params, *, D, W, input_ch, output_ch, skips,
                   out_rescale=1.0, act_fn=None,
                   tile_sp=2048, sub_sp=512,
                   param_dtype=jnp.float32, vmem_limit_bytes=None):
    """Pallas implementation of MLPDecoder2D.forward. x is NCHW."""
    B, C, H, Wsp = x.shape
    assert C == input_ch
    HW = H * Wsp

    x3 = x.reshape(B, C, HW)                     # NCHW -> [B, C, H*W] (free)
    tile_sp, sub_sp, HW_pad = _choose_tiles(HW, B, tile_sp, sub_sp)
    if HW_pad != HW:
        x3 = jnp.pad(x3, ((0, 0), (0, 0), (0, HW_pad - HW)))
    n_sub = tile_sp // sub_sp

    slab, plan = _pack_params(params, D=D, W=W, input_ch=input_ch,
                              output_ch=output_ch, skips=skips,
                              param_dtype=param_dtype)

    kernel = functools.partial(_mlp_decoder_kernel, plan, n_sub, sub_sp,
                               float(out_rescale), act_fn)

    extra = {}
    if vmem_limit_bytes is not None:
        extra["vmem_limit_bytes"] = int(vmem_limit_bytes)

    out3 = pl.pallas_call(
        kernel,
        out_shape=jax.ShapeDtypeStruct((B, output_ch, HW_pad), x.dtype),
        grid=(B, HW_pad // tile_sp),
        in_specs=[
            # pixel block: batch squeezed, all channels, tile_sp lanes
            pl.BlockSpec((None, input_ch, tile_sp), lambda b, j: (b, 0, j)),
            # single packed parameter slab, resident across the whole grid
            pl.BlockSpec(slab.shape, lambda b, j: (0, 0)),
        ],
        out_specs=pl.BlockSpec((None, output_ch, tile_sp),
                               lambda b, j: (b, 0, j)),
        compiler_params=pltpu.CompilerParams(
            dimension_semantics=("parallel", "parallel"), **extra),
    )(x3, slab)

    out = out3[:, :, :HW].reshape(B, output_ch, H, Wsp)
    return out


def init_params(key, *, D, W, input_ch, output_ch, skips,
                init_zero_output=False):
    """Deterministic params in PyTorch layout: weight [out, in], bias [out]."""
    params = {"pts": [], "out": None}
    for i in range(D):
        if i == 0:
            fan_in = input_ch
        elif (i - 1) in skips:
            fan_in = W + input_ch
        else:
            fan_in = W
        key, kw, kb = jax.random.split(key, 3)
        bound = 1.0 / (fan_in ** 0.5)
        w = jax.random.uniform(kw, (W, fan_in), jnp.float32, -bound, bound)
        b = jax.random.uniform(kb, (W,), jnp.float32, -bound, bound)
        params["pts"].append((w, b))
    key, kw, kb = jax.random.split(key, 3)
    bound = 1.0 / (W ** 0.5)
    if init_zero_output:
        w_out = jnp.zeros((output_ch, W), jnp.float32)
        b_out = jnp.zeros((output_ch,), jnp.float32)
    else:
        w_out = jax.random.uniform(kw, (output_ch, W), jnp.float32,
                                   -bound, bound)
        b_out = jax.random.uniform(kb, (output_ch,), jnp.float32,
                                   -bound, bound)
    params["out"] = (w_out, b_out)
    return params


def mlp_decoder_2d_ref(x, params, *, D, W, input_ch, output_ch, skips,
                       out_rescale=1.0, act_fn=None):
    """Pure-JAX reference mirroring the PyTorch forward exactly."""
    B, C, H, Wsp = x.shape
    xin = jnp.transpose(x, (0, 2, 3, 1)).reshape(-1, input_ch)
    h = xin
    for i in range(D):
        w, b = params["pts"][i]                  # [out, in], [out]
        h = jax.nn.relu(h @ w.T + b)
        if i in skips:
            h = jnp.concatenate([xin, h], axis=-1)
    w_out, b_out = params["out"]
    out = h @ w_out.T + b_out
    out = out.reshape(B, H, Wsp, -1).transpose(0, 3, 1, 2) * out_rescale
    if act_fn is not None:
        out = act_fn(out)
    return out


if __name__ == "__main__":
    D, W_hid = 8, 32
    input_ch, output_ch = 4, 3
    skips = [4]

    key = jax.random.PRNGKey(0)
    key, kp, kx1, kx2 = jax.random.split(key, 4)
    params = init_params(kp, D=D, W=W_hid, input_ch=input_ch,
                         output_ch=output_ch, skips=skips)

    # --- Test 1: B=2, 16x16, fused rescale + activation epilogue ---------
    B, H, Wsp = 2, 16, 16
    x1 = jax.random.normal(kx1, (B, input_ch, H, Wsp), jnp.float32)
    out1 = mlp_decoder_2d(x1, params, D=D, W=W_hid, input_ch=input_ch,
                          output_ch=output_ch, skips=skips,
                          out_rescale=0.5, act_fn=jnp.tanh)
    out1 = jax.block_until_ready(out1)
    ref1 = mlp_decoder_2d_ref(x1, params, D=D, W=W_hid, input_ch=input_ch,
                              output_ch=output_ch, skips=skips,
                              out_rescale=0.5, act_fn=jnp.tanh)
    assert out1.shape == (B, output_ch, H, Wsp)
    assert jnp.allclose(out1, ref1, atol=1e-5, rtol=1e-5)

    # --- Test 2: non-multiple spatial size (padding path), multi-tile grid
    #     and >1 compute sub-tile per DMA block --------------------------
    B2, H2, W2 = 2, 24, 20                       # H*W = 480 (not /256)
    x2 = jax.random.normal(kx2, (B2, input_ch, H2, W2), jnp.float32)
    out2 = mlp_decoder_2d(x2, params, D=D, W=W_hid, input_ch=input_ch,
                          output_ch=output_ch, skips=skips,
                          out_rescale=1.0, act_fn=None,
                          tile_sp=256, sub_sp=128)
    out2 = jax.block_until_ready(out2)
    ref2 = mlp_decoder_2d_ref(x2, params, D=D, W=W_hid, input_ch=input_ch,
                              output_ch=output_ch, skips=skips,
                              out_rescale=1.0, act_fn=None)
    assert out2.shape == (B2, output_ch, H2, W2)
    assert jnp.allclose(out2, ref2, atol=1e-5, rtol=1e-5)

    print("KERNEL_OK")
</pallas_src>

<mosaic_0001>
module attributes {stable_mosaic.version = 11 : i64} {
  func.func @_mlp_decoder_kernel(%arg0: i32, %arg1: i32, %arg2: memref<1x4x256xf32, #tpu.memory_space<vmem>>, %arg3: memref<296x128xf32, #tpu.memory_space<vmem>>, %arg4: memref<1x3x256xf32, #tpu.memory_space<vmem>>) attributes {dimension_semantics = [#tpu.dimension_semantics<parallel>, #tpu.dimension_semantics<parallel>], iteration_bounds = array<i64: 2, 1>, scalar_prefetch = 0 : i64, scratch_operands = 0 : i64, tpu.core_type = #tpu.core_type<tc>, window_params = [{transform_indices = @transform_0, window_bounds = array<i64: 1, 4, 256>}, {pipeline_mode = #tpu.pipeline_mode<synchronous>, transform_indices = @transform_1, window_bounds = array<i64: 296, 128>}, {transform_indices = @transform_2, window_bounds = array<i64: 1, 3, 256>}]} {
    %c0 = arith.constant 0 : index
    %c0_0 = arith.constant 0 : index
    %c0_1 = arith.constant 0 : index
    %0 = vector.load %arg2[%c0, %c0_0, %c0_1] : memref<1x4x256xf32, #tpu.memory_space<vmem>>, vector<1x4x256xf32>
    %1 = vector.shape_cast %0 : vector<1x4x256xf32> to vector<4x256xf32>
    %c0_2 = arith.constant 0 : index
    %c0_3 = arith.constant 0 : index
    %2 = vector.load %arg3[%c0_2, %c0_3] : memref<296x128xf32, #tpu.memory_space<vmem>>, vector<32x4xf32>
    %cst = arith.constant dense<0.000000e+00> : vector<32x256xf32>
    %3 = tpu.matmul %2, %1, %cst {dimension_numbers = #tpu.dot_dimension_numbers<[1], [0], [0], [1], [0, 0, 1, 1], [], []>} : vector<32x4xf32>, vector<4x256xf32>, vector<32x256xf32> -> vector<32x256xf32>
    %c0_4 = arith.constant 0 : index
    %c4 = arith.constant 4 : index
    %4 = vector.load %arg3[%c0_4, %c4] : memref<296x128xf32, #tpu.memory_space<vmem>>, vector<32x1xf32>
    %5 = vector.broadcast %4 : vector<32x1xf32> to vector<32x256xf32>
    %6 = arith.addf %3, %5 : vector<32x256xf32>
    %cst_5 = arith.constant 0.000000e+00 : f32
    %7 = vector.broadcast %cst_5 : f32 to vector<32x256xf32>
    %8 = arith.maximumf %6, %7 : vector<32x256xf32>
    %c32 = arith.constant 32 : index
    %c0_6 = arith.constant 0 : index
    %9 = vector.load %arg3[%c32, %c0_6] : memref<296x128xf32, #tpu.memory_space<vmem>>, vector<32x32xf32>
    %cst_7 = arith.constant dense<0.000000e+00> : vector<32x256xf32>
    %10 = tpu.matmul %9, %8, %cst_7 {dimension_numbers = #tpu.dot_dimension_numbers<[1], [0], [0], [1], [0, 0, 1, 1], [], []>} : vector<32x32xf32>, vector<32x256xf32>, vector<32x256xf32> -> vector<32x256xf32>
    %c32_8 = arith.constant 32 : index
    %c32_9 = arith.constant 32 : index
    %11 = vector.load %arg3[%c32_8, %c32_9] : memref<296x128xf32, #tpu.memory_space<vmem>>, vector<32x1xf32>
    %12 = vector.broadcast %11 : vector<32x1xf32> to vector<32x256xf32>
    %13 = arith.addf %10, %12 : vector<32x256xf32>
    %cst_10 = arith.constant 0.000000e+00 : f32
    %14 = vector.broadcast %cst_10 : f32 to vector<32x256xf32>
    %15 = arith.maximumf %13, %14 : vector<32x256xf32>
    %c64 = arith.constant 64 : index
    %c0_11 = arith.constant 0 : index
    %16 = vector.load %arg3[%c64, %c0_11] : memref<296x128xf32, #tpu.memory_space<vmem>>, vector<32x32xf32>
    %cst_12 = arith.constant dense<0.000000e+00> : vector<32x256xf32>
    %17 = tpu.matmul %16, %15, %cst_12 {dimension_numbers = #tpu.dot_dimension_numbers<[1], [0], [0], [1], [0, 0, 1, 1], [], []>} : vector<32x32xf32>, vector<32x256xf32>, vector<32x256xf32> -> vector<32x256xf32>
    %c64_13 = arith.constant 64 : index
    %c32_14 = arith.constant 32 : index
    %18 = vector.load %arg3[%c64_13, %c32_14] : memref<296x128xf32, #tpu.memory_space<vmem>>, vector<32x1xf32>
    %19 = vector.broadcast %18 : vector<32x1xf32> to vector<32x256xf32>
    %20 = arith.addf %17, %19 : vector<32x256xf32>
    %cst_15 = arith.constant 0.000000e+00 : f32
    %21 = vector.broadcast %cst_15 : f32 to vector<32x256xf32>
    %22 = arith.maximumf %20, %21 : vector<32x256xf32>
    %c96 = arith.constant 96 : index
    %c0_16 = arith.constant 0 : index
    %23 = vector.load %arg3[%c96, %c0_16] : memref<296x128xf32, #tpu.memory_space<vmem>>, vector<32x32xf32>
    %cst_17 = arith.constant dense<0.000000e+00> : vector<32x256xf32>
    %24 = tpu.matmul %23, %22, %cst_17 {dimension_numbers = #tpu.dot_dimension_numbers<[1], [0], [0], [1], [0, 0, 1, 1], [], []>} : vector<32x32xf32>, vector<32x256xf32>, vector<32x256xf32> -> vector<32x256xf32>
    %c96_18 = arith.constant 96 : index
    %c32_19 = arith.constant 32 : index
    %25 = vector.load %arg3[%c96_18, %c32_19] : memref<296x128xf32, #tpu.memory_space<vmem>>, vector<32x1xf32>
    %26 = vector.broadcast %25 : vector<32x1xf32> to vector<32x256xf32>
    %27 = arith.addf %24, %26 : vector<32x256xf32>
    %cst_20 = arith.constant 0.000000e+00 : f32
    %28 = vector.broadcast %cst_20 : f32 to vector<32x256xf32>
    %29 = arith.maximumf %27, %28 : vector<32x256xf32>
    %c128 = arith.constant 128 : index
    %c0_21 = arith.constant 0 : index
    %30 = vector.load %arg3[%c128, %c0_21] : memref<296x128xf32, #tpu.memory_space<vmem>>, vector<32x32xf32>
    %cst_22 = arith.constant dense<0.000000e+00> : vector<32x256xf32>
    %31 = tpu.matmul %30, %29, %cst_22 {dimension_numbers = #tpu.dot_dimension_numbers<[1], [0], [0], [1], [0, 0, 1, 1], [], []>} : vector<32x32xf32>, vector<32x256xf32>, vector<32x256xf32> -> vector<32x256xf32>
    %c128_23 = arith.constant 128 : index
    %c32_24 = arith.constant 32 : index
    %32 = vector.load %arg3[%c128_23, %c32_24] : memref<296x128xf32, #tpu.memory_space<vmem>>, vector<32x1xf32>
    %33 = vector.broadcast %32 : vector<32x1xf32> to vector<32x256xf32>
    %34 = arith.addf %31, %33 : vector<32x256xf32>
    %cst_25 = arith.constant 0.000000e+00 : f32
    %35 = vector.broadcast %cst_25 : f32 to vector<32x256xf32>
    %36 = arith.maximumf %34, %35 : vector<32x256xf32>
    %c160 = arith.constant 160 : index
    %c0_26 = arith.constant 0 : index
    %37 = vector.load %arg3[%c160, %c0_26] : memref<296x128xf32, #tpu.memory_space<vmem>>, vector<32x4xf32>
    %cst_27 = arith.constant dense<0.000000e+00> : vector<32x256xf32>
    %38 = tpu.matmul %37, %1, %cst_27 {dimension_numbers = #tpu.dot_dimension_numbers<[1], [0], [0], [1], [0, 0, 1, 1], [], []>} : vector<32x4xf32>, vector<4x256xf32>, vector<32x256xf32> -> vector<32x256xf32>
    %c192 = arith.constant 192 : index
    %c0_28 = arith.constant 0 : index
    %39 = vector.load %arg3[%c192, %c0_28] : memref<296x128xf32, #tpu.memory_space<vmem>>, vector<32x32xf32>
    %cst_29 = arith.constant dense<0.000000e+00> : vector<32x256xf32>
    %40 = tpu.matmul %39, %36, %cst_29 {dimension_numbers = #tpu.dot_dimension_numbers<[1], [0], [0], [1], [0, 0, 1, 1], [], []>} : vector<32x32xf32>, vector<32x256xf32>, vector<32x256xf32> -> vector<32x256xf32>
    %41 = arith.addf %38, %40 : vector<32x256xf32>
    %c192_30 = arith.constant 192 : index
    %c32_31 = arith.constant 32 : index
    %42 = vector.load %arg3[%c192_30, %c32_31] : memref<296x128xf32, #tpu.memory_space<vmem>>, vector<32x1xf32>
    %43 = vector.broadcast %42 : vector<32x1xf32> to vector<32x256xf32>
    %44 = arith.addf %41, %43 : vector<32x256xf32>
    %cst_32 = arith.constant 0.000000e+00 : f32
    %45 = vector.broadcast %cst_32 : f32 to vector<32x256xf32>
    %46 = arith.maximumf %44, %45 : vector<32x256xf32>
    %c224 = arith.constant 224 : index
    %c0_33 = arith.constant 0 : index
    %47 = vector.load %arg3[%c224, %c0_33] : memref<296x128xf32, #tpu.memory_space<vmem>>, vector<32x32xf32>
    %cst_34 = arith.constant dense<0.000000e+00> : vector<32x256xf32>
    %48 = tpu.matmul %47, %46, %cst_34 {dimension_numbers = #tpu.dot_dimension_numbers<[1], [0], [0], [1], [0, 0, 1, 1], [], []>} : vector<32x32xf32>, vector<32x256xf32>, vector<32x256xf32> -> vector<32x256xf32>
    %c224_35 = arith.constant 224 : index
    %c32_36 = arith.constant 32 : index
    %49 = vector.load %arg3[%c224_35, %c32_36] : memref<296x128xf32, #tpu.memory_space<vmem>>, vector<32x1xf32>
    %50 = vector.broadcast %49 : vector<32x1xf32> to vector<32x256xf32>
    %51 = arith.addf %48, %50 : vector<32x256xf32>
    %cst_37 = arith.constant 0.000000e+00 : f32
    %52 = vector.broadcast %cst_37 : f32 to vector<32x256xf32>
    %53 = arith.maximumf %51, %52 : vector<32x256xf32>
    %c256 = arith.constant 256 : index
    %c0_38 = arith.constant 0 : index
    %54 = vector.load %arg3[%c256, %c0_38] : memref<296x128xf32, #tpu.memory_space<vmem>>, vector<32x32xf32>
    %cst_39 = arith.constant dense<0.000000e+00> : vector<32x256xf32>
    %55 = tpu.matmul %54, %53, %cst_39 {dimension_numbers = #tpu.dot_dimension_numbers<[1], [0], [0], [1], [0, 0, 1, 1], [], []>} : vector<32x32xf32>, vector<32x256xf32>, vector<32x256xf32> -> vector<32x256xf32>
    %c256_40 = arith.constant 256 : index
    %c32_41 = arith.constant 32 : index
    %56 = vector.load %arg3[%c256_40, %c32_41] : memref<296x128xf32, #tpu.memory_space<vmem>>, vector<32x1xf32>
    %57 = vector.broadcast %56 : vector<32x1xf32> to vector<32x256xf32>
    %58 = arith.addf %55, %57 : vector<32x256xf32>
    %cst_42 = arith.constant 0.000000e+00 : f32
    %59 = vector.broadcast %cst_42 : f32 to vector<32x256xf32>
    %60 = arith.maximumf %58, %59 : vector<32x256xf32>
    %c288 = arith.constant 288 : index
    %c0_43 = arith.constant 0 : index
    %61 = vector.load %arg3[%c288, %c0_43] : memref<296x128xf32, #tpu.memory_space<vmem>>, vector<3x32xf32>
    %cst_44 = arith.constant dense<0.000000e+00> : vector<3x256xf32>
    %62 = tpu.matmul %61, %60, %cst_44 {dimension_numbers = #tpu.dot_dimension_numbers<[1], [0], [0], [1], [0, 0, 1, 1], [], []>} : vector<3x32xf32>, vector<32x256xf32>, vector<3x256xf32> -> vector<3x256xf32>
    %c288_45 = arith.constant 288 : index
    %c32_46 = arith.constant 32 : index
    %63 = vector.load %arg3[%c288_45, %c32_46] : memref<296x128xf32, #tpu.memory_space<vmem>>, vector<3x1xf32>
    %64 = vector.broadcast %63 : vector<3x1xf32> to vector<3x256xf32>
    %65 = arith.addf %62, %64 : vector<3x256xf32>
    %cst_47 = arith.constant 5.000000e-01 : f32
    %66 = vector.broadcast %cst_47 : f32 to vector<3x256xf32>
    %67 = arith.mulf %65, %66 : vector<3x256xf32>
    %68 = math.tanh %67 : vector<3x256xf32>
    %c0_48 = arith.constant 0 : index
    %c0_49 = arith.constant 0 : index
    %c0_50 = arith.constant 0 : index
    %69 = vector.load %arg4[%c0_48, %c0_49, %c0_50] : memref<1x3x256xf32, #tpu.memory_space<vmem>>, vector<1x3x256xf32>
    %70 = vector.shape_cast %69 : vector<1x3x256xf32> to vector<3x256xf32>
    %71 = vector.shape_cast %68 : vector<3x256xf32> to vector<1x3x256xf32>
    tpu.vector_store %arg4[%c0_48, %c0_49, %c0_50], %71 {strides = array<i32>} : memref<1x3x256xf32, #tpu.memory_space<vmem>>, vector<1x3x256xf32>,
    return
  }
  func.func @transform_0(%arg0: i32, %arg1: i32) -> (i32, i32, i32) {
    %c0_i32 = arith.constant 0 : i32
    %c0_i32_0 = arith.constant 0 : i32
    return %arg0, %c0_i32, %arg1 : i32, i32, i32
  }
  func.func @transform_1(%arg0: i32, %arg1: i32) -> (i32, i32) {
    %c0_i32 = arith.constant 0 : i32
    %c0_i32_0 = arith.constant 0 : i32
    %c0_i32_1 = arith.constant 0 : i32
    return %c0_i32, %c0_i32_0 : i32, i32
  }
  func.func @transform_2(%arg0: i32, %arg1: i32) -> (i32, i32, i32) {
    %c0_i32 = arith.constant 0 : i32
    %c0_i32_0 = arith.constant 0 : i32
    return %arg0, %c0_i32, %arg1 : i32, i32, i32
  }
}

</mosaic_0001>

<bundles_post_ra>
// kernel: tpu_custom_call.1
= control target key start
LH: loop header
LB: loop body
LE: loop exit
PB: predicated region body
PF: predicated region fallthrough
CT: control target
= control target key end

     0   :  { %7 = vsyncpa [#allocation3], 0  ;;  %s2272_s0 = inlined_call_operand.hbm [shape: f32[2,4,256], index: 0, kind: input, shape index: {}]   ;;  %s2273_s1 = inlined_call_operand.hbm [shape: f32[296,128], index: 1, kind: input, shape index: {}]   ;;  %s2274_s2 = inlined_call_operand.vmem [shape: f32[2,3,256], index: 2, kind: output, shape index: {}]  }
   0x1   :  { %9 = vsyncpa [#allocation3 + $0x1], 0 }
   0x2   :  { %10 = vsyncpa [#allocation5], 0  ;;  %s1909_s9 = smov 0   ;;  %s1911_s10 = smov 0  }
   0x3   :  { %s1913_s11 = smov 0   ;;  %s1915_s12 = smov 0  }
   0x4   :  { %s1917_s13 = smov 0   ;;  %s1919_s14 = smov 0  }
   0x5 LB: > { %s1561_s15 = sadd.s32 4294967295, %s1885_s14   ;;  %p50_p0 = scmp.ne.s32.totalorder %s1869_s10, %s1865_s9  ;;  %s1885_s14 = sphi %s1919_s14, %s16_s14   ;;  %s1881_s13 = sphi %s1917_s13, %s2291_s13   ;;  %s1877_s12 = sphi %s1915_s12, %s2290_s12   ;;  %s1873_s11 = sphi %s1913_s11, %s2289_s11   ;;  %s1869_s10 = sphi %s1911_s10, %s2288_s10   ;;  %s1865_s9 = sphi %s1909_s9, %s2287_s9  }
   0x6   : > { %p1939_p1 = scmp.eq.s32.totalorder %s1561_s15, 0  ;;  %p1563_p2 = scmp.ge.s32.totalorder %s1885_s14, 1 }
   0x7   : > { %p110_p3 = scmp.lt.s32.totalorder %s1885_s14, 3  ;;  %s1887_s19 = smov [#allocation4]  }
   0x8   : > { %s2279_s16 = scalar_select %p1939_p1, 1, 0 }
   0x9   : > { %p1947_p4 = por %p1939_p1, %p50_p0  ;;  %p1951_p5 = pnand %p1563_p2, %p110_p3 }
   0xa   : > { %s122_s20 = sshll.u32 %s1887_s19, 4  ;;  %s28_s22 = sadd.s32 1, %s1881_s13  ;;  %s123_s20 = int_to_ptr.vmem [resolvable:$true] %s122_s20 }
   0xb   : > { %s2280_s17 = scalar_select %p1947_p4, 1, 0 }
   0xc   : > { %s2281_s18 = scalar_select %p1951_p5, 1, 0 }
   0xd   : > { %p1699_p6 = pneg %p1951_p5  ;;  %s1773_s25 = scalar_lea.hbm %s2273_s1, 4736 }
   0xe   : > { %p1774_p8 = scmp.ne.s32.totalorder %s2273_s1, %s1773_s25  ;;  %p1780_p12 = scmp.lt.u32.totalorder %s1773_s25, %s2273_s1 }
   0xf   : > { %p1959_p7 = pnand %p1699_p6, %p1939_p1 }
  0x11   : > { %p1775_p9 = pneg %p1959_p7 }
  0x13   : > { %p1776_p10 = pnand %p1775_p9, %p1774_p8 }
  0x15   : > { %p1777_p11 = pneg %p1776_p10 }
  0x17   : > { %p1782_p13 = pnand %p1780_p12, %p1777_p11 }
  0x19   : > { %1785 = shalt.err (!%p1782_p13)
}
  0x1a   : > { %s1786_s30 = scalar_lea.vmem %s123_s20, 4736  ;;  %p1794_p6 = scmp.lt.s32.totalorder %s123_s20, %s123_s20 }
  0x1b   : > { %p1787_p0 = scmp.ne.s32.totalorder %s123_s20, %s1786_s30  ;;  %p1795_p1 = scmp.lt.s32.totalorder %s1786_s30, %s1786_s30 }
  0x1d   : > { %p1789_p2 = pnand %p1787_p0, %p1775_p9  ;;  %p1796_p4 = por %p1795_p1, %p1794_p6 }
  0x1f   : > { %p1790_p3 = pneg %p1789_p2 }
  0x21   : > { %p1797_p5 = pnand %p1796_p4, %p1790_p3 }
  0x23   : > { %1800 = shalt.err (!%p1797_p5)
}
  0x24   : > { %s1888_s3 = smov 128   ;;  %s1889_s4 = smov 8  }
  0x25   : > { %1702 = dma.hbm_to_vmem [thread:$0]  (!%p1959_p7), %s2273_s1, 4736, %s123_s20, [#allocation5], %s1888_s3, %s1888_s3, %s1889_s4  }
  0x26   : > { %p30_p1 = scmp.ge.s32.totalorder %s28_s22, 2  ;;  %s37_s7 = sadd.s32 1, %s1873_s11 }
  0x27   : > { %p44_p4 = scmp.ne.s32.totalorder %s1873_s11, %s1869_s10  ;;  %p45_p5 = scmp.eq.s32.totalorder %s1885_s14, 0 }
  0x28   : > { %s2293_s22 = smov (%p30_p1, %s28_s22), 0  ;;  %p1708_p9 = scmp.lt.s32.totalorder %s1885_s14, 2 }
  0x29   : > { %p46_p8 = por %p45_p5, %p44_p4  ;;  %s32_s8 = ssub.s32 %s1881_s13, %s2293_s22 }
  0x2a   : > { %s136_s9 = sand.u32 1, %s1873_s11   ;;  %p35_p10 = scmp.eq.s32.totalorder %s32_s8, 0 }
  0x2b   : > { %s1566_s15 = sshll.u32 %s136_s9, 3  ;;  %s1617_s19 = sshll.u32 %s1881_s13, 7 }
  0x2c   : > { %s1992_s23 = scalar_select %p35_p10, %s1873_s11, %s37_s7  }
  0x2d   : > { %s1997_s20 = scalar_lea.hbm %s2272_s0, %s1617_s19  ;;  %s140_s25 = scalar_lea.vmem [#allocation2], %s1566_s15 }
  0x2e   : > { %s150_s26 = sshll.u32 %s140_s25, 4  ;;  %p1999_p7 = pnand %p1708_p9, %p46_p8  ;;  %s2003_s26 = int_to_ptr.vmem [resolvable:$true] %s150_s26 }
  0x2f   : > { %s137_s28 = scalar_lea.sflag [#allocation3], %s136_s9  ;;  %s1801_s29 = scalar_lea.hbm %s1997_s20, 128 }
  0x30   : > { %p1802_p11 = scmp.ne.s32.totalorder %s1997_s20, %s1801_s29  ;;  %p1803_p12 = pneg %p1999_p7 }
  0x31   : > { %s1806_s4 = scalar_lea.hbm %s2272_s0, 256  ;;  %p1807_p2 = scmp.lt.u32.totalorder %s1997_s20, %s2272_s0 }
  0x32   : > { %p1804_p13 = pnand %p1803_p12, %p1802_p11  ;;  %p1808_p3 = scmp.lt.u32.totalorder %s1806_s4, %s1801_s29 }
  0x33   : > { %p1810_p1 = scmp.lt.u32.totalorder %s1801_s29, %s1997_s20 }
  0x34   : > { %p1805_p0 = pneg %p1804_p13  ;;  %p1809_p6 = por %p1808_p3, %p1807_p2 }
  0x36   : > { %p1811_p4 = por %p1810_p1, %p1809_p6 }
  0x38   : > { %p1812_p5 = pnand %p1811_p4, %p1805_p0 }
  0x3a   : > { %1815 = shalt.err (!%p1812_p5)
}
  0x3b   : > { %s1816_s7 = scalar_lea.vmem %s2003_s26, 128  ;;  %s1890_s8 = smov [#allocation2]  }
  0x3c   : > { %p1817_p8 = scmp.ne.s32.totalorder %s2003_s26, %s1816_s7  ;;  %s1821_s9 = sshll.u32 %s1890_s8, 4  ;;  %s1822_s9 = int_to_ptr.vmem [resolvable:$false] %s1821_s9 }
  0x3d   : > { %s1823_s15 = scalar_lea.vmem %s1822_s9, 256  ;;  %p1824_p11 = scmp.lt.s32.totalorder %s2003_s26, %s1822_s9 }
  0x3e   : > { %p1819_p9 = pnand %p1817_p8, %p1803_p12  ;;  %p1825_p13 = scmp.lt.s32.totalorder %s1823_s15, %s1816_s7 }
  0x40   : > { %p1820_p10 = pneg %p1819_p9  ;;  %p1826_p2 = por %p1825_p13, %p1824_p11 }
  0x42   : > { %p1827_p3 = pnand %p1826_p2, %p1820_p10 }
  0x44   : > { %1830 = shalt.err (!%p1827_p3)
}
  0x45   : > { %1706 = dma.hbm_to_vmem [thread:$0]  (!%p1999_p7), %s1997_s20, 128, %s2003_s26, %s137_s28  }
  0x46   : > { %p2284_p0 = scmp.ne.s32.totalorder %s2281_s18, 0 }
  0x47   : > { %s161_s19 = sand.u32 (!%p2284_p0), 1, %s1869_s10   ;;  %p2285_p12 = scmp.ne.s32.totalorder (!%p2284_p0), %s2280_s17, 0 }
  0x48   : > { %159 = sbr.rel (%p2284_p0) target bundleno = 2212 (0x8a4), region = 28  ;;  %s1570_s21 = sshll.u32 (!%p2284_p0), %s161_s19, 3 }
  0x49   : > { %s162_s24 = scalar_lea.sflag (!%p2284_p0), [#allocation3], %s161_s19  ;;  %s165_s25 = scalar_lea.vmem (!%p2284_p0), [#allocation2], %s1570_s21 }
  0x4f   : > { %1856 = dma.done.wait (%p2285_p12), %s162_s24, 128  }
  0x50   : > { %1858 = vsyncadd (%p2285_p12), %s162_s24, 4294967168  ;;  %p2286_p6 = scmp.ne.s32.totalorder %s2279_s16, 0 }
  0x52   : > { %1860 = dma.done.wait (%p2286_p6), [#allocation5], 4736  }
  0x53   : > { %1862 = vsyncadd (%p2286_p6), [#allocation5], 4294962560  ;;  %v1891_v0 = vmov 0.0   ;;  %v1892_v1 = vmov 4   ;;  %v2043_v2 = vld [vmem:[%s165_s25] sm:$0xff]  ;;  %vm241_vm0 = vcmask 1043456  }
  0x54   : > { %310 = vmatprep.mubr.f32.mxu0 %v1891_v0  ;;  %322 = vmatprep.mubr.f32.mxu1 %v1891_v0  ;;  %v206_v3 = vld [vmem:[#allocation4] sm:$0xff]  ;;  %v208_v4 = vld [vmem:[#allocation4 + $0x10] sm:$0xff]  ;;  %v2047_v5 = vcombine.high %v2043_v2, %v2043_v2  ;;  %vm232_vm1 = vcmask 31744   ;;  %v207_v6 = vld [vmem:[#allocation4 + $0x8] sm:$0xff]  ;;  %v1893_v10 = vmov 32   ;;  %vm367_vm2 = vcmask 261120  }
  0x55   : > { %1764 = vset.pattern.permute.xlu0 %v1892_v1  ;;  %1765 = vset.pattern.permute.xlu1 %v1892_v1  ;;  %v209_v7 = vld [vmem:[#allocation4 + $0x18] sm:$0xff]  ;;  %v2065_v8 = vld [vmem:[#allocation4 + $0x20] sm:$0xff]  ;;  %v2067_v9 = vld [vmem:[#allocation4 + $0x28] sm:$0xff]  ;;  %p196_p7 = scmp.lt.s32.totalorder %s1877_s12, 1 }
  0x56   : > { %212 = vperm.xlu0 %1764, %v206_v3   ;;  %222 = vperm.xlu1 %1765, %v208_v4   ;;  %v2071_v11 = vld [vmem:[#allocation4 + $0x30] sm:$0xff]  ;;  %v2073_v12 = vld [vmem:[#allocation4 + $0x38] sm:$0xff]  ;;  %v2077_v13 = vld [vmem:[#allocation4 + $0x40] sm:$0xff] }
  0x57   : > { %1574 = vmatprep.subr.msk.mxu0 %vm241_vm0, %v2047_v5  ;;  %1683 = vmatprep.subr.msk.mxu1 %vm241_vm0, %v2047_v5  ;;  %v2079_v14 = vld [vmem:[#allocation4 + $0x48] sm:$0xff]  ;;  %v2083_v15 = vld [vmem:[#allocation4 + $0x50] sm:$0xff]  ;;  %v2085_v16 = vld [vmem:[#allocation4 + $0x58] sm:$0xff]  ;;  %s2295_s12 = smov (!%p196_p7, %s1877_s12), 1 }
  0x58   : > { %1575 = vmatpush1.msk.msra.mxu0 %vm241_vm0, %v2043_v2  ;;  %1684 = vmatpush1.msk.msra.mxu1 %vm241_vm0, %v2043_v2  ;;  %v2089_v17 = vld [vmem:[#allocation4 + $0x60] sm:$0xff]  ;;  %v2091_v18 = vld [vmem:[#allocation4 + $0x68] sm:$0xff]  ;;  %v2095_v19 = vld [vmem:[#allocation4 + $0x70] sm:$0xff]  ;;  %s1618_s16 = sshll.u32 %s2295_s12, 3 }
  0x59   : > { %1576 = vmatmul.mubr.msk.f32.vlgmr.msra.gmra.mrb[0].mxu0 %vm232_vm1, %v206_v3  ;;  %1578 = vmatmul.mubr.msk.f32.vlgmr.msra.gmra.mrb[0].mxu1 %vm232_vm1, %v208_v4  ;;  %v2097_v20 = vld [vmem:[#allocation4 + $0x78] sm:$0xff]  ;;  %v2101_v21 = vld [vmem:[#allocation4 + $0x80] sm:$0xff]  ;;  %v2103_v22 = vld [vmem:[#allocation4 + $0x88] sm:$0xff]  ;;  %s203_s20 = scalar_lea.vmem %s2274_s2, %s1618_s16 }
  0x5a   : > { %316 = vmatprep.mubr.f32.mxu0 %v1891_v0  ;;  %328 = vmatprep.mubr.f32.mxu1 %v1891_v0  ;;  %v2107_v23 = vld [vmem:[#allocation4 + $0x90] sm:$0xff]  ;;  %v2109_v24 = vld [vmem:[#allocation4 + $0x98] sm:$0xff]  ;;  %v2113_v25 = vld [vmem:[#allocation4 + $0xc0] sm:$0xff] }
  0x5b   : > { %217 = vperm.xlu0 %1764, %v207_v6   ;;  %227 = vperm.xlu1 %1765, %v209_v7   ;;  %v2115_v26 = vld [vmem:[#allocation4 + $0xc8] sm:$0xff]  ;;  %v2119_v27 = vld [vmem:[#allocation4 + $0xd0] sm:$0xff]  ;;  %v2121_v28 = vld [vmem:[#allocation4 + $0xd8] sm:$0xff] }
  0x5c   : > { %v2125_v29 = vld [vmem:[#allocation4 + $0xe0] sm:$0xff]  ;;  %v2127_v30 = vld [vmem:[#allocation4 + $0xe8] sm:$0xff]  ;;  %v2131_v31 = vld [vmem:[#allocation4 + $0xf0] sm:$0xff] }
  0x5d   : > { %1577 = vmatmul.mubr.msk.f32.gmra.mrb[2].mxu0 %vm232_vm1, %v207_v6  ;;  %1579 = vmatmul.mubr.msk.f32.gmra.mrb[2].mxu1 %vm232_vm1, %v209_v7  ;;  %v2133_v32 = vld [vmem:[#allocation4 + $0xf8] sm:$0xff]  ;;  %v2137_v33 = vld [vmem:[#allocation4 + $0x100] sm:$0xff]  ;;  %v2139_v34 = vld [vmem:[#allocation4 + $0x108] sm:$0xff] }
  0x5e   : > { %440 = vmatprep.mubr.f32.mxu1 %v1891_v0  ;;  %569 = vmatprep.mubr.f32.mxu0 %v1891_v0  ;;  %v2143_v35 = vld [vmem:[#allocation4 + $0x110] sm:$0xff]  ;;  %v2145_v36 = vld [vmem:[#allocation4 + $0x118] sm:$0xff]  ;;  %v2149_v37 = vld [vmem:[#allocation4 + $0x120] sm:$0x7] }
  0x5f   : > { %1767 = vset.pattern.permute.xlu1 %v1893_v10  ;;  %1766 = vset.pattern.permute.xlu0 %v1893_v10 }
  0x60   : > { %354 = vperm.xlu1 %1767, %v2067_v9   ;;  %349 = vperm.xlu0 %1766, %v2065_v8  }
  0x64   : > { %359 = vperm.xlu1 %1767, %v2071_v11   ;;  %364 = vperm.xlu0 %1766, %v2073_v12  }
  0x68   : > { %479 = vperm.xlu1 %1767, %v2077_v13   ;;  %484 = vperm.xlu0 %1766, %v2079_v14  }
  0x6c   : > { %489 = vperm.xlu1 %1767, %v2083_v15   ;;  %494 = vperm.xlu0 %1766, %v2085_v16  }
  0x70   : > { %608 = vperm.xlu1 %1767, %v2089_v17   ;;  %613 = vperm.xlu0 %1766, %v2091_v18  }
  0x74   : > { %618 = vperm.xlu1 %1767, %v2095_v19   ;;  %623 = vperm.xlu0 %1766, %v2097_v20  }
  0x78   : > { %737 = vperm.xlu1 %1767, %v2101_v21   ;;  %742 = vperm.xlu0 %1766, %v2103_v22  }
  0x7c   : > { %747 = vperm.xlu1 %1767, %v2107_v23   ;;  %752 = vperm.xlu0 %1766, %v2109_v24  }
  0x80   : > { %1076 = vperm.xlu1 %1767, %v2113_v25   ;;  %1081 = vperm.xlu0 %1766, %v2115_v26  }
  0x84   : > { %1086 = vperm.xlu1 %1767, %v2119_v27   ;;  %1091 = vperm.xlu0 %1766, %v2121_v28  }
  0x88   : > { %1116 = vperm.xlu1 %1767, %v2125_v29   ;;  %1121 = vperm.xlu0 %1766, %v2127_v30  }
  0x8c   : > { %1126 = vperm.xlu1 %1767, %v2131_v31   ;;  %1131 = vperm.xlu0 %1766, %v2133_v32  }
  0x90   : > { %1245 = vperm.xlu1 %1767, %v2137_v33   ;;  %1250 = vperm.xlu0 %1766, %v2139_v34  }
  0x94   : > { %1255 = vperm.xlu1 %1767, %v2143_v35   ;;  %1260 = vperm.xlu0 %1766, %v2145_v36  }
  0x98   : > { %1371 = vperm.xlu1 %1767, %v2149_v37  }
  0xd5   : > { %v223_v38 = vpop.permute.xlu1 %222  ;;  %v213_v39 = vpop.permute.xlu0 %212 }
  0xda   : > { %v228_v46 = vpop.permute.xlu1 %227  ;;  %v218_v48 = vpop.permute.xlu0 %217 }
 0x12c   : > { %v312_v40 = vpop.f32.mrb[0].mxu0  ;;  %v324_v41 = vpop.f32.mrb[0].mxu1 }
 0x12d   : > { %v314_v42 = vpop.f32.mrb[1].mxu0  ;;  %v325_v43 = vadd.f32 %v324_v41, %v223_v38  ;;  %v326_v44 = vpop.f32.mrb[1].mxu1  ;;  %v313_v47 = vadd.f32 %v312_v40, %v213_v39 }
 0x12e   : > { %v327_v45 = vadd.f32 %v326_v44, %v223_v38  ;;  %v315_v49 = vadd.f32 %v314_v42, %v213_v39  ;;  %v355_v41 = vpop.permute.xlu1 %354 }
 0x12f   : > { %v339_v52 = vmax.f32 %v325_v43, 0.0  ;;  %v335_v60 = vmax.f32 %v313_v47, 0.0 }
 0x130   : > { %v318_v50 = vpop.f32.mrb[2].mxu0  ;;  %v330_v51 = vpop.f32.mrb[2].mxu1  ;;  %v340_v57 = vmax.f32 %v327_v45, 0.0  ;;  %v336_v63 = vmax.f32 %v315_v49, 0.0 }
 0x131   : > { %v319_v53 = vadd.f32 %v318_v50, %v218_v48  ;;  %v331_v54 = vadd.f32 %v330_v51, %v228_v46  ;;  %v320_v55 = vpop.f32.mrb[3].mxu0  ;;  %v332_v56 = vpop.f32.mrb[3].mxu1 }
 0x132   : > { %v321_v58 = vadd.f32 %v320_v55, %v218_v48  ;;  %v333_v59 = vadd.f32 %v332_v56, %v228_v46 }
 0x133   : > { %v337_v61 = vmax.f32 %v319_v53, 0.0  ;;  %v341_v62 = vmax.f32 %v331_v54, 0.0 }
 0x134   : > { %v338_v1 = vmax.f32 %v321_v58, 0.0  ;;  %v342_v3 = vmax.f32 %v333_v59, 0.0 }
 0x135   : > { %v1621_v4 = vpack.c.bf16 %v337_v61, %v335_v60  ;;  %v1625_v6 = vpack.c.bf16 %v341_v62, %v339_v52 }
 0x136   : > { %v1619_v7 = vpack.c.bf16 %v338_v1, %v336_v63  ;;  %v1623_v10 = vpack.c.bf16 %v342_v3, %v340_v57 }
 0x138   : > { %1620 = vmatprep.subr.bf16.mxu1 %v1619_v7 }
 0x139   : > { %1622 = vmatpush1.bf16.msra.mxu1 %v1621_v4 }
 0x13a   : > { %1624 = vmatprep.subr.bf16.mxu1 %v1623_v10 }
 0x13d   : > { %1626 = vmatpush1.bf16.msra.mxu1 %v1625_v6 }
 0x140   : > { %1580 = vmatmul.mubr.msk.f32.vlgmr.msra.gmra.mrb[4].mxu1 %vm367_vm2, %v2065_v8  ;;  %v350_v8 = vpop.permute.xlu0 %349 }
 0x141   : > { %446 = vmatprep.mubr.f32.mxu1 %v1891_v0 }
 0x144   : > { %1581 = vmatmul.mubr.msk.f32.gmra.mrb[6].mxu1 %vm367_vm2, %v2067_v9  ;;  %v365_v54 = vpop.permute.xlu0 %364 }
 0x145   : > { %452 = vmatprep.mubr.f32.mxu1 %v1891_v0 }
 0x148   : > { %1582 = vmatmul.mubr.msk.f32.gmra.mrb[8].mxu1 %vm367_vm2, %v2071_v11  ;;  %v485_v10 = vpop.permute.xlu0 %484 }
 0x149   : > { %458 = vmatprep.mubr.f32.mxu1 %v1891_v0 }
 0x14c   : > { %1583 = vmatmul.mubr.msk.f32.gmra.mrb[10].mxu1 %vm367_vm2, %v2073_v12  ;;  %v360_v12 = vpop.permute.xlu1 %359 }
 0x14d   : > { %698 = vmatprep.mubr.f32.mxu1 %v1891_v0 }
 0x213   : > { %v442_v38 = vpop.f32.mrb[4].mxu1 }
 0x214   : > { %v444_v39 = vpop.f32.mrb[5].mxu1  ;;  %v443_v40 = vadd.f32 %v442_v38, %v350_v8 }
 0x215   : > { %v445_v42 = vadd.f32 %v444_v39, %v350_v8 }
 0x216   : > { %v465_v46 = vmax.f32 %v443_v40, 0.0 }
 0x217   : > { %v448_v43 = vpop.f32.mrb[6].mxu1  ;;  %v466_v11 = vmax.f32 %v445_v42, 0.0 }
 0x218   : > { %v449_v9 = vadd.f32 %v448_v43, %v355_v41  ;;  %v450_v44 = vpop.f32.mrb[7].mxu1 }
 0x219   : > { %v451_v45 = vadd.f32 %v450_v44, %v355_v41 }
 0x21a   : > { %v467_v47 = vmax.f32 %v449_v9, 0.0 }
 0x21b   : > { %v468_v48 = vmax.f32 %v451_v45, 0.0  ;;  %v454_v49 = vpop.f32.mrb[8].mxu1 }
 0x21c   : > { %v1629_v50 = vpack.c.bf16 %v467_v47, %v465_v46  ;;  %v456_v51 = vpop.f32.mrb[9].mxu1  ;;  %v455_v53 = vadd.f32 %v454_v49, %v360_v12 }
 0x21d   : > { %v1627_v52 = vpack.c.bf16 %v468_v48, %v466_v11  ;;  %v457_v55 = vadd.f32 %v456_v51, %v360_v12  ;;  %v495_v11 = vpop.permute.xlu0 %494 }
 0x21e   : > { %v469_v60 = vmax.f32 %v455_v53, 0.0 }
 0x21f   : > { %v460_v56 = vpop.f32.mrb[10].mxu1  ;;  %1628 = vmatprep.subr.bf16.mxu0 %v1627_v52  ;;  %v470_v62 = vmax.f32 %v457_v55, 0.0 }
 0x220   : > { %v461_v57 = vadd.f32 %v460_v56, %v365_v54  ;;  %v462_v58 = vpop.f32.mrb[11].mxu1  ;;  %1630 = vmatpush1.bf16.msra.mxu0 %v1629_v50 }
 0x221   : > { %v463_v59 = vadd.f32 %v462_v58, %v365_v54 }
 0x222   : > { %v471_v61 = vmax.f32 %v461_v57, 0.0 }
 0x223   : > { %v472_v63 = vmax.f32 %v463_v59, 0.0 }
 0x224   : > { %v1633_v1 = vpack.c.bf16 %v471_v61, %v469_v60  ;;  %v614_v61 = vpop.permute.xlu0 %613 }
 0x225   : > { %v1631_v3 = vpack.c.bf16 %v472_v63, %v470_v62 }
 0x227   : > { %1632 = vmatprep.subr.bf16.mxu0 %v1631_v3 }
 0x228   : > { %1634 = vmatpush1.bf16.msra.mxu0 %v1633_v1 }
 0x22b   : > { %1584 = vmatmul.mubr.msk.f32.vlgmr.msra.gmra.mrb[4].mxu0 %vm367_vm2, %v2077_v13  ;;  %v480_v13 = vpop.permute.xlu1 %479 }
 0x22c   : > { %575 = vmatprep.mubr.f32.mxu0 %v1891_v0 }
 0x22f   : > { %1585 = vmatmul.mubr.msk.f32.gmra.mrb[6].mxu0 %vm367_vm2, %v2079_v14 }
 0x230   : > { %581 = vmatprep.mubr.f32.mxu0 %v1891_v0 }
 0x233   : > { %1586 = vmatmul.mubr.msk.f32.gmra.mrb[8].mxu0 %vm367_vm2, %v2083_v15 }
 0x234   : > { %587 = vmatprep.mubr.f32.mxu0 %v1891_v0 }
 0x237   : > { %1587 = vmatmul.mubr.msk.f32.gmra.mrb[10].mxu0 %vm367_vm2, %v2085_v16  ;;  %v490_v16 = vpop.permute.xlu1 %489 }
 0x238   : > { %827 = vmatprep.mubr.f32.mxu0 %v1891_v0 }
 0x2fe   : > { %v571_v4 = vpop.f32.mrb[4].mxu0 }
 0x2ff   : > { %v573_v6 = vpop.f32.mrb[5].mxu0  ;;  %v572_v7 = vadd.f32 %v571_v4, %v480_v13 }
 0x300   : > { %v574_v38 = vadd.f32 %v573_v6, %v480_v13 }
 0x301   : > { %v594_v41 = vmax.f32 %v572_v7, 0.0 }
 0x302   : > { %v577_v39 = vpop.f32.mrb[6].mxu0  ;;  %v595_v15 = vmax.f32 %v574_v38, 0.0 }
 0x303   : > { %v578_v14 = vadd.f32 %v577_v39, %v485_v10  ;;  %v579_v8 = vpop.f32.mrb[7].mxu0 }
 0x304   : > { %v580_v40 = vadd.f32 %v579_v8, %v485_v10  ;;  %v624_v8 = vpop.permute.xlu0 %623 }
 0x305   : > { %v596_v42 = vmax.f32 %v578_v14, 0.0 }
 0x306   : > { %v597_v43 = vmax.f32 %v580_v40, 0.0  ;;  %v583_v9 = vpop.f32.mrb[8].mxu0 }
 0x307   : > { %v1637_v44 = vpack.c.bf16 %v596_v42, %v594_v41  ;;  %v585_v45 = vpop.f32.mrb[9].mxu0  ;;  %v584_v47 = vadd.f32 %v583_v9, %v490_v16 }
 0x308   : > { %v1635_v46 = vpack.c.bf16 %v597_v43, %v595_v15  ;;  %v586_v48 = vadd.f32 %v585_v45, %v490_v16 }
 0x309   : > { %v598_v52 = vmax.f32 %v584_v47, 0.0 }
 0x30a   : > { %v589_v49 = vpop.f32.mrb[10].mxu0  ;;  %1636 = vmatprep.subr.bf16.mxu1 %v1635_v46  ;;  %v599_v54 = vmax.f32 %v586_v48, 0.0 }
 0x30b   : > { %v590_v50 = vadd.f32 %v589_v49, %v495_v11  ;;  %v591_v51 = vpop.f32.mrb[11].mxu0  ;;  %1638 = vmatpush1.bf16.msra.mxu1 %v1637_v44 }
 0x30c   : > { %v592_v12 = vadd.f32 %v591_v51, %v495_v11 }
 0x30d   : > { %v600_v53 = vmax.f32 %v590_v50, 0.0  ;;  %v743_v50 = vpop.permute.xlu0 %742 }
 0x30e   : > { %v601_v55 = vmax.f32 %v592_v12, 0.0 }
 0x30f   : > { %v1641_v56 = vpack.c.bf16 %v600_v53, %v598_v52 }
 0x310   : > { %v1639_v57 = vpack.c.bf16 %v601_v55, %v599_v54 }
 0x312   : > { %1640 = vmatprep.subr.bf16.mxu1 %v1639_v57 }
 0x313   : > { %1642 = vmatpush1.bf16.msra.mxu1 %v1641_v56 }
 0x316   : > { %1588 = vmatmul.mubr.msk.f32.vlgmr.msra.gmra.mrb[12].mxu1 %vm367_vm2, %v2089_v17  ;;  %v609_v17 = vpop.permute.xlu1 %608 }
 0x317   : > { %704 = vmatprep.mubr.f32.mxu1 %v1891_v0 }
 0x31a   : > { %1589 = vmatmul.mubr.msk.f32.gmra.mrb[14].mxu1 %vm367_vm2, %v2091_v18 }
 0x31b   : > { %710 = vmatprep.mubr.f32.mxu1 %v1891_v0 }
 0x31e   : > { %1590 = vmatmul.mubr.msk.f32.gmra.mrb[16].mxu1 %vm367_vm2, %v2095_v19 }
 0x31f   : > { %716 = vmatprep.mubr.f32.mxu1 %v1891_v0 }
 0x322   : > { %1591 = vmatmul.mubr.msk.f32.gmra.mrb[18].mxu1 %vm367_vm2, %v2097_v20  ;;  %v619_v20 = vpop.permute.xlu1 %618 }
 0x323   : > { %944 = vmatprep.mubr.f32.mxu1 %v1891_v0 }
 0x3e9   : > { %v700_v58 = vpop.f32.mrb[12].mxu1 }
 0x3ea   : > { %v702_v59 = vpop.f32.mrb[13].mxu1  ;;  %v701_v60 = vadd.f32 %v700_v58, %v609_v17 }
 0x3eb   : > { %v703_v62 = vadd.f32 %v702_v59, %v609_v17 }
 0x3ec   : > { %v723_v4 = vmax.f32 %v701_v60, 0.0 }
 0x3ed   : > { %v706_v63 = vpop.f32.mrb[14].mxu1  ;;  %v724_v19 = vmax.f32 %v703_v62, 0.0 }
 0x3ee   : > { %v707_v18 = vadd.f32 %v706_v63, %v614_v61  ;;  %v708_v1 = vpop.f32.mrb[15].mxu1 }
 0x3ef   : > { %v709_v3 = vadd.f32 %v708_v1, %v614_v61  ;;  %v753_v61 = vpop.permute.xlu0 %752 }
 0x3f0   : > { %v725_v6 = vmax.f32 %v707_v18, 0.0 }
 0x3f1   : > { %v726_v13 = vmax.f32 %v709_v3, 0.0  ;;  %v712_v7 = vpop.f32.mrb[16].mxu1 }
 0x3f2   : > { %v1645_v10 = vpack.c.bf16 %v725_v6, %v723_v4  ;;  %v714_v38 = vpop.f32.mrb[17].mxu1  ;;  %v713_v14 = vadd.f32 %v712_v7, %v619_v20 }
 0x3f3   : > { %v1643_v39 = vpack.c.bf16 %v726_v13, %v724_v19  ;;  %v715_v40 = vadd.f32 %v714_v38, %v619_v20 }
 0x3f4   : > { %v727_v9 = vmax.f32 %v713_v14, 0.0 }
 0x3f5   : > { %v718_v41 = vpop.f32.mrb[18].mxu1  ;;  %1644 = vmatprep.subr.bf16.mxu0 %v1643_v39  ;;  %v728_v45 = vmax.f32 %v715_v40, 0.0  ;;  %v1082_v39 = vpop.permute.xlu0 %1081 }
 0x3f6   : > { %v719_v42 = vadd.f32 %v718_v41, %v624_v8  ;;  %v720_v15 = vpop.f32.mrb[19].mxu1  ;;  %1646 = vmatpush1.bf16.msra.mxu0 %v1645_v10 }
 0x3f7   : > { %v721_v43 = vadd.f32 %v720_v15, %v624_v8 }
 0x3f8   : > { %v729_v44 = vmax.f32 %v719_v42, 0.0 }
 0x3f9   : > { %v730_v16 = vmax.f32 %v721_v43, 0.0 }
 0x3fa   : > { %v1649_v46 = vpack.c.bf16 %v729_v44, %v727_v9 }
 0x3fb   : > { %v1647_v47 = vpack.c.bf16 %v730_v16, %v728_v45 }
 0x3fd   : > { %1648 = vmatprep.subr.bf16.mxu0 %v1647_v47 }
 0x3fe   : > { %1650 = vmatpush1.bf16.msra.mxu0 %v1649_v46 }
 0x401   : > { %1592 = vmatmul.mubr.msk.f32.vlgmr.msra.gmra.mrb[12].mxu0 %vm367_vm2, %v2101_v21  ;;  %v738_v21 = vpop.permute.xlu1 %737 }
 0x402   : > { %833 = vmatprep.mubr.f32.mxu0 %v1891_v0 }
 0x405   : > { %1593 = vmatmul.mubr.msk.f32.gmra.mrb[14].mxu0 %vm367_vm2, %v2103_v22 }
 0x406   : > { %839 = vmatprep.mubr.f32.mxu0 %v1891_v0 }
 0x409   : > { %1594 = vmatmul.mubr.msk.f32.gmra.mrb[16].mxu0 %vm367_vm2, %v2107_v23 }
 0x40a   : > { %845 = vmatprep.mubr.f32.mxu0 %v1891_v0 }
 0x40d   : > { %1595 = vmatmul.mubr.msk.f32.gmra.mrb[18].mxu0 %vm367_vm2, %v2109_v24  ;;  %v748_v24 = vpop.permute.xlu1 %747 }
 0x40e   : > { %1206 = vmatprep.mubr.f32.mxu0 %v1891_v0 }
 0x411   : > { %v1077_v38 = vpop.permute.xlu1 %1076 }
 0x415   : > { %v1087_v47 = vpop.permute.xlu1 %1086 }
 0x4d4   : > { %v829_v11 = vpop.f32.mrb[12].mxu0 }
 0x4d5   : > { %v831_v48 = vpop.f32.mrb[13].mxu0  ;;  %v830_v49 = vadd.f32 %v829_v11, %v738_v21 }
 0x4d6   : > { %v832_v51 = vadd.f32 %v831_v48, %v738_v21  ;;  %v1092_v21 = vpop.permute.xlu0 %1091 }
 0x4d7   : > { %v852_v54 = vmax.f32 %v830_v49, 0.0 }
 0x4d8   : > { %v835_v12 = vpop.f32.mrb[14].mxu0  ;;  %v853_v23 = vmax.f32 %v832_v51, 0.0 }
 0x4d9   : > { %v836_v22 = vadd.f32 %v835_v12, %v743_v50  ;;  %v837_v52 = vpop.f32.mrb[15].mxu0 }
 0x4da   : > { %v838_v53 = vadd.f32 %v837_v52, %v743_v50 }
 0x4db   : > { %v854_v55 = vmax.f32 %v836_v22, 0.0 }
 0x4dc   : > { %v855_v56 = vmax.f32 %v838_v53, 0.0  ;;  %v841_v57 = vpop.f32.mrb[16].mxu0 }
 0x4dd   : > { %v1653_v58 = vpack.c.bf16 %v854_v55, %v852_v54  ;;  %v843_v59 = vpop.f32.mrb[17].mxu0  ;;  %v842_v60 = vadd.f32 %v841_v57, %v748_v24 }
 0x4de   : > { %v1651_v17 = vpack.c.bf16 %v855_v56, %v853_v23  ;;  %v844_v62 = vadd.f32 %v843_v59, %v748_v24  ;;  %v1122_v24 = vpop.permute.xlu0 %1121 }
 0x4df   : > { %v856_v4 = vmax.f32 %v842_v60, 0.0 }
 0x4e0   : > { %v847_v63 = vpop.f32.mrb[18].mxu0  ;;  %1652 = vmatprep.subr.bf16.mxu1 %v1651_v17  ;;  %v857_v19 = vmax.f32 %v844_v62, 0.0 }
 0x4e1   : > { %v848_v18 = vadd.f32 %v847_v63, %v753_v61  ;;  %v849_v1 = vpop.f32.mrb[19].mxu0  ;;  %1654 = vmatpush1.bf16.msra.mxu1 %v1653_v58 }
 0x4e2   : > { %v850_v3 = vadd.f32 %v849_v1, %v753_v61 }
 0x4e3   : > { %v858_v6 = vmax.f32 %v848_v18, 0.0 }
 0x4e4   : > { %v859_v13 = vmax.f32 %v850_v3, 0.0 }
 0x4e5   : > { %v1657_v7 = vpack.c.bf16 %v858_v6, %v856_v4 }
 0x4e6   : > { %v1655_v10 = vpack.c.bf16 %v859_v13, %v857_v19 }
 0x4e8   : > { %1656 = vmatprep.subr.bf16.mxu1 %v1655_v10 }
 0x4e9   : > { %1658 = vmatpush1.bf16.msra.mxu1 %v1657_v7  ;;  %v1132_v7 = vpop.permute.xlu0 %1131 }
 0x4ea   : > { %1600 = vmatprep.subr.msk.mxu1 %vm241_vm0, %v2047_v5  ;;  %v860_v5 = vld [vmem:[#allocation4 + $0xa0] sm:$0xff] }
 0x4ec   : > { %1596 = vmatmul.mubr.msk.f32.vlgmr.msra.gmra.mrb[20].mxu1 %vm367_vm2, %v2113_v25  ;;  %v862_v25 = vld [vmem:[#allocation4 + $0xb0] sm:$0xff] }
 0x4ed   : > { %950 = vmatprep.mubr.f32.mxu1 %v1891_v0  ;;  %1601 = vmatpush1.msk.msra.mxu1 %vm241_vm0, %v2043_v2  ;;  %v861_v2 = vld [vmem:[#allocation4 + $0xa8] sm:$0xff] }
 0x4f0   : > { %1597 = vmatmul.mubr.msk.f32.gmra.mrb[22].mxu1 %vm367_vm2, %v2115_v26  ;;  %v863_v26 = vld [vmem:[#allocation4 + $0xb8] sm:$0xff] }
 0x4f1   : > { %956 = vmatprep.mubr.f32.mxu1 %v1891_v0 }
 0x4f4   : > { %1598 = vmatmul.mubr.msk.f32.gmra.mrb[24].mxu1 %vm367_vm2, %v2119_v27 }
 0x4f5   : > { %962 = vmatprep.mubr.f32.mxu1 %v1891_v0 }
 0x4f8   : > { %1599 = vmatmul.mubr.msk.f32.gmra.mrb[26].mxu1 %vm367_vm2, %v2121_v28 }
 0x4f9   : > { %1045 = vmatprep.mubr.f32.mxu1 %v1891_v0 }
 0x4fc   : > { %1602 = vmatmul.mubr.msk.f32.vlgmr.msra.gmra.mrb[20].mxu1 %vm232_vm1, %v860_v5 }
 0x4fd   : > { %1051 = vmatprep.mubr.f32.mxu1 %v1891_v0 }
 0x500   : > { %1603 = vmatmul.mubr.msk.f32.gmra.mrb[22].mxu1 %vm232_vm1, %v861_v2 }
 0x501   : > { %1057 = vmatprep.mubr.f32.mxu1 %v1891_v0 }
 0x504   : > { %1604 = vmatmul.mubr.msk.f32.gmra.mrb[24].mxu1 %vm232_vm1, %v862_v25 }
 0x505   : > { %1063 = vmatprep.mubr.f32.mxu1 %v1891_v0 }
 0x508   : > { %1605 = vmatmul.mubr.msk.f32.gmra.mrb[26].mxu1 %vm232_vm1, %v863_v26 }
 0x509   : > { %1440 = vmatprep.mubr.f32.mxu1 %v1891_v0 }
 0x5cf   : > { %v1047_v27 = vpop.f32.mrb[20].mxu1 }
 0x5d0   : > { %v1049_v28 = vpop.f32.mrb[21].mxu1  ;;  %v1094_v20 = vadd.f32 %v1077_v38, %v1047_v27 }
 0x5d1   : > { %v1095_v14 = vadd.f32 %v1077_v38, %v1049_v28 }
 0x5d2   : > { %v1102_v15 = vmax.f32 %v1094_v20, 0.0 }
 0x5d3   : > { %v1053_v8 = vpop.f32.mrb[22].mxu1  ;;  %v1103_v9 = vmax.f32 %v1095_v14, 0.0 }
 0x5d4   : > { %v1096_v40 = vadd.f32 %v1082_v39, %v1053_v8  ;;  %v1055_v41 = vpop.f32.mrb[23].mxu1 }
 0x5d5   : > { %v1097_v42 = vadd.f32 %v1082_v39, %v1055_v41 }
 0x5d6   : > { %v1104_v43 = vmax.f32 %v1096_v40, 0.0 }
 0x5d7   : > { %v1105_v44 = vmax.f32 %v1097_v42, 0.0  ;;  %v1059_v45 = vpop.f32.mrb[24].mxu1 }
 0x5d8   : > { %v1661_v16 = vpack.c.bf16 %v1104_v43, %v1102_v15  ;;  %v1061_v46 = vpop.f32.mrb[25].mxu1  ;;  %v1098_v48 = vadd.f32 %v1087_v47, %v1059_v45 }
 0x5d9   : > { %v1659_v11 = vpack.c.bf16 %v1105_v44, %v1103_v9  ;;  %v1099_v49 = vadd.f32 %v1087_v47, %v1061_v46 }
 0x5da   : > { %v1106_v52 = vmax.f32 %v1098_v48, 0.0 }
 0x5db   : > { %v1065_v50 = vpop.f32.mrb[26].mxu1  ;;  %1660 = vmatprep.subr.bf16.mxu0 %v1659_v11  ;;  %v1107_v54 = vmax.f32 %v1099_v49, 0.0 }
 0x5dc   : > { %v1100_v51 = vadd.f32 %v1092_v21, %v1065_v50  ;;  %v1067_v12 = vpop.f32.mrb[27].mxu1  ;;  %1662 = vmatpush1.bf16.msra.mxu0 %v1661_v16 }
 0x5dd   : > { %v1101_v22 = vadd.f32 %v1092_v21, %v1067_v12 }
 0x5de   : > { %v1108_v53 = vmax.f32 %v1100_v51, 0.0 }
 0x5df   : > { %v1109_v55 = vmax.f32 %v1101_v22, 0.0 }
 0x5e0   : > { %v1665_v23 = vpack.c.bf16 %v1108_v53, %v1106_v52 }
 0x5e1   : > { %v1663_v56 = vpack.c.bf16 %v1109_v55, %v1107_v54 }
 0x5e3   : > { %1664 = vmatprep.subr.bf16.mxu0 %v1663_v56 }
 0x5e4   : > { %1666 = vmatpush1.bf16.msra.mxu0 %v1665_v23 }
 0x5e7   : > { %1606 = vmatmul.mubr.msk.f32.vlgmr.msra.gmra.mrb[20].mxu0 %vm367_vm2, %v2125_v29  ;;  %v1117_v29 = vpop.permute.xlu1 %1116 }
 0x5e8   : > { %1212 = vmatprep.mubr.f32.mxu0 %v1891_v0 }
 0x5eb   : > { %1607 = vmatmul.mubr.msk.f32.gmra.mrb[22].mxu0 %vm367_vm2, %v2127_v30 }
 0x5ec   : > { %1218 = vmatprep.mubr.f32.mxu0 %v1891_v0 }
 0x5ef   : > { %1608 = vmatmul.mubr.msk.f32.gmra.mrb[24].mxu0 %vm367_vm2, %v2131_v31 }
 0x5f0   : > { %1224 = vmatprep.mubr.f32.mxu0 %v1891_v0 }
 0x5f3   : > { %1609 = vmatmul.mubr.msk.f32.gmra.mrb[26].mxu0 %vm367_vm2, %v2133_v32  ;;  %v1127_v32 = vpop.permute.xlu1 %1126 }
 0x5f4   : > { %1335 = vmatprep.mubr.f32.mxu0 %v1891_v0 }
 0x5f7   : > { %v1246_v41 = vpop.permute.xlu1 %1245 }
 0x5fb   : > { %v1256_v48 = vpop.permute.xlu1 %1255 }
 0x6ba   : > { %v1208_v57 = vpop.f32.mrb[20].mxu0 }
 0x6bb   : > { %v1210_v58 = vpop.f32.mrb[21].mxu0  ;;  %v1209_v59 = vadd.f32 %v1208_v57, %v1117_v29 }
 0x6bc   : > { %v1211_v17 = vadd.f32 %v1210_v58, %v1117_v29  ;;  %v1372_v58 = vpop.permute.xlu1 %1371 }
 0x6bd   : > { %v1231_v63 = vmax.f32 %v1209_v59, 0.0 }
 0x6be   : > { %v1214_v60 = vpop.f32.mrb[22].mxu0  ;;  %v1232_v31 = vmax.f32 %v1211_v17, 0.0 }
 0x6bf   : > { %v1215_v30 = vadd.f32 %v1214_v60, %v1122_v24  ;;  %v1216_v61 = vpop.f32.mrb[23].mxu0 }
 0x6c0   : > { %v1217_v62 = vadd.f32 %v1216_v61, %v1122_v24 }
 0x6c1   : > { %v1233_v18 = vmax.f32 %v1215_v30, 0.0 }
 0x6c2   : > { %v1234_v1 = vmax.f32 %v1217_v62, 0.0  ;;  %v1220_v3 = vpop.f32.mrb[24].mxu0 }
 0x6c3   : > { %v1669_v4 = vpack.c.bf16 %v1233_v18, %v1231_v63  ;;  %v1222_v6 = vpop.f32.mrb[25].mxu0  ;;  %v1221_v13 = vadd.f32 %v1220_v3, %v1127_v32 }
 0x6c4   : > { %v1667_v19 = vpack.c.bf16 %v1234_v1, %v1232_v31  ;;  %v1223_v10 = vadd.f32 %v1222_v6, %v1127_v32 }
 0x6c5   : > { %v1235_v27 = vmax.f32 %v1221_v13, 0.0 }
 0x6c6   : > { %v1226_v5 = vpop.f32.mrb[26].mxu0  ;;  %1668 = vmatprep.subr.bf16.mxu0 %v1667_v19  ;;  %v1236_v38 = vmax.f32 %v1223_v10, 0.0 }
 0x6c7   : > { %v1227_v2 = vadd.f32 %v1226_v5, %v1132_v7  ;;  %v1228_v25 = vpop.f32.mrb[27].mxu0  ;;  %1670 = vmatpush1.bf16.msra.mxu0 %v1669_v4 }
 0x6c8   : > { %v1229_v26 = vadd.f32 %v1228_v25, %v1132_v7 }
 0x6c9   : > { %v1237_v28 = vmax.f32 %v1227_v2, 0.0 }
 0x6ca   : > { %v1238_v20 = vmax.f32 %v1229_v26, 0.0 }
 0x6cb   : > { %v1673_v39 = vpack.c.bf16 %v1237_v28, %v1235_v27 }
 0x6cc   : > { %v1671_v14 = vpack.c.bf16 %v1238_v20, %v1236_v38 }
 0x6ce   : > { %1672 = vmatprep.subr.bf16.mxu0 %v1671_v14 }
 0x6cf   : > { %1674 = vmatpush1.bf16.msra.mxu0 %v1673_v39 }
 0x6d2   : > { %1610 = vmatmul.mubr.msk.f32.vlgmr.msra.gmra.mrb[28].mxu0 %vm367_vm2, %v2137_v33  ;;  %v1251_v33 = vpop.permute.xlu0 %1250 }
 0x6d3   : > { %1341 = vmatprep.mubr.f32.mxu0 %v1891_v0 }
 0x6d6   : > { %1611 = vmatmul.mubr.msk.f32.gmra.mrb[30].mxu0 %vm367_vm2, %v2139_v34  ;;  %v1261_v49 = vpop.permute.xlu0 %1260 }
 0x6d7   : > { %1347 = vmatprep.mubr.f32.mxu0 %v1891_v0 }
 0x6da   : > { %1612 = vmatmul.mubr.msk.f32.gmra.mrb[32].mxu0 %vm367_vm2, %v2143_v35 }
 0x6db   : > { %1353 = vmatprep.mubr.f32.mxu0 %v1891_v0 }
 0x6de   : > { %1613 = vmatmul.mubr.msk.f32.gmra.mrb[34].mxu0 %vm367_vm2, %v2145_v36 }
 0x7a5   : > { %v1337_v8 = vpop.f32.mrb[28].mxu0 }
 0x7a6   : > { %v1339_v40 = vpop.f32.mrb[29].mxu0  ;;  %v1338_v42 = vadd.f32 %v1337_v8, %v1246_v41 }
 0x7a7   : > { %v1340_v15 = vadd.f32 %v1339_v40, %v1246_v41 }
 0x7a8   : > { %v1360_v45 = vmax.f32 %v1338_v42, 0.0 }
 0x7a9   : > { %v1343_v43 = vpop.f32.mrb[30].mxu0  ;;  %v1361_v46 = vmax.f32 %v1340_v15, 0.0 }
 0x7aa   : > { %v1344_v9 = vadd.f32 %v1343_v43, %v1251_v33  ;;  %v1345_v44 = vpop.f32.mrb[31].mxu0 }
 0x7ab   : > { %v1346_v34 = vadd.f32 %v1345_v44, %v1251_v33 }
 0x7ac   : > { %v1362_v16 = vmax.f32 %v1344_v9, 0.0 }
 0x7ad   : > { %v1363_v47 = vmax.f32 %v1346_v34, 0.0  ;;  %v1349_v35 = vpop.f32.mrb[32].mxu0 }
 0x7ae   : > { %v1677_v11 = vpack.c.bf16 %v1362_v16, %v1360_v45  ;;  %v1351_v0 = vpop.f32.mrb[33].mxu0  ;;  %v1350_v36 = vadd.f32 %v1349_v35, %v1256_v48 }
 0x7af   : > { %v1675_v21 = vpack.c.bf16 %v1363_v47, %v1361_v46  ;;  %v1352_v50 = vadd.f32 %v1351_v0, %v1256_v48 }
 0x7b0   : > { %v1364_v53 = vmax.f32 %v1350_v36, 0.0 }
 0x7b1   : > { %v1355_v51 = vpop.f32.mrb[34].mxu0  ;;  %1676 = vmatprep.subr.bf16.mxu1 %v1675_v21  ;;  %v1365_v55 = vmax.f32 %v1352_v50, 0.0 }
 0x7b2   : > { %v1356_v12 = vadd.f32 %v1355_v51, %v1261_v49  ;;  %v1357_v22 = vpop.f32.mrb[35].mxu0  ;;  %1678 = vmatpush1.bf16.msra.mxu1 %v1677_v11 }
 0x7b3   : > { %v1358_v52 = vadd.f32 %v1357_v22, %v1261_v49 }
 0x7b4   : > { %v1366_v54 = vmax.f32 %v1356_v12, 0.0 }
 0x7b5   : > { %v1367_v23 = vmax.f32 %v1358_v52, 0.0 }
 0x7b6   : > { %v1681_v56 = vpack.c.bf16 %v1366_v54, %v1364_v53 }
 0x7b7   : > { %v1679_v57 = vpack.c.bf16 %v1367_v23, %v1365_v55 }
 0x7b9   : > { %1680 = vmatprep.subr.bf16.mxu1 %v1679_v57 }
 0x7ba   : > { %1682 = vmatpush1.bf16.msra.mxu1 %v1681_v56 }
 0x7bd   : > { %1614 = vmatmul.mubr.msk.f32.vlgmr.msra.gmra.mrb[28].mxu1 %vm367_vm2, %v2149_v37 }
 0x890   : > { %v1442_v29 = vpop.f32.mrb[28].mxu1 }
 0x891   : > { %v1443_v59 = vadd.f32 %v1442_v29, %v1372_v58  ;;  %v1444_v24 = vpop.f32.mrb[29].mxu1 }
 0x892   : > { %v1445_v17 = vadd.f32 %v1444_v24, %v1372_v58 }
 0x893   : > { %v1447_v60 = vmul.f32 0.5, %v1443_v59 }
 0x894   : > { %v1448_v30 = vmul.f32 0.5, %v1445_v17 }
 0x895   : > { %1769 = vtanh.f32 %v1447_v60 }
 0x896   : > { %1771 = vtanh.f32 %v1448_v30 }
 0x89f   : > { %v1770_v61 = vpop.eup %1769 }
 0x8a0   : > { %v1772_v62 = vpop.eup %1771 }
 0x8a1   : > { %v1453_v63 = vcombine.low %v1770_v61, %v1772_v62 }
 0x8a3   : > { %1455 = vst [vmem:[%s203_s20] sm:$0x77] %v1453_v63 }
 0x8a4 PF: > { %s16_s14 = sadd.s32 1, %s1885_s14   ;;  %s2287_s9 = smov %s1869_s10 }
 0x8a5   : > { %p13_p1 = scmp.ge.s32.totalorder %s16_s14, 4   ;;  %s2288_s10 = smov %s1873_s11 }
 0x8a6   : > { %s2289_s11 = smov %s1992_s23  ;;  %s2290_s12 = smov %s1881_s13 }
 0x8a7   : > { %s2291_s13 = smov %s2293_s22  ;;  %15 = sbr.rel (!%p13_p1) target bundleno = 5 (0x5), region = 72 }
 0x8ae   :  { %1486 = vsyncpa [#allocation3], 1 }
 0x8af   :  { %1488 = vsyncpa [#allocation3 + $0x1], 1 }
 0x8b0   :  { %1489 = vsyncpa [#allocation5], 1 }

</bundles_post_ra>
